<compile_context>
chip_gen: v5e
topology: v5e:2x2
jax: 0.10.0
libtpu: 0.0.40
codegen_flags: <defaults>
</compile_context>

<pallas_src>
import jax
import jax.numpy as jnp
from jax import lax
from jax.experimental import pallas as pl
from jax.experimental.pallas import tpu as pltpu


def _round_up(v, m):
    return ((v + m - 1) // m) * m


def _upsample_conv_kernel(x_ref, w_ref, b_ref, o_ref):
    """One row-tile of fused (nearest-2x upsample + 3x3 conv).

    x_ref: (TH+2, Wp8, Cin)   zero-padded original-res slab (+1 halo row each side,
                              +1 col pad each side, cols rounded up to mult of 8)
    w_ref: (2, 9*Cin, 2*Cout) folded phase weights; K rows ordered (dx, dy, cin),
                              columns ordered (px, cout); one slice per row phase py
    b_ref: (1, 2*Cout)        bias replicated over the two column phases (f32)
    o_ref: (TH, 2, W, 2*Cout) out[r, py, x, px*Cout + c] = y[2*(r0+r)+py, 2*x+px, c]
    """
    th = o_ref.shape[0]
    w_out = o_ref.shape[2]

    # Upcast to f32 for the tap gather/concat (keeps sublane slicing simple even
    # for packed bf16 inputs); matmul inputs are cast back to the weight dtype so
    # the MXU still runs at bf16 input width when requested.
    x = x_ref[...].astype(jnp.float32)                       # (TH+2, Wp8, Cin)

    # im2col over the 3x3 window at ORIGINAL resolution: one fat matmul with
    # K = 9*Cin instead of 9 thin K = Cin matmuls.  dy shifts are leading-dim
    # slices (free); dx shifts are small sublane slices.
    taps = [x[dy:dy + th, dx:dx + w_out, :]
            for dx in range(3) for dy in range(3)]
    t9 = jnp.concatenate(taps, axis=-1)                      # (TH, W, 9*Cin)
    t2 = t9.reshape(th * w_out, t9.shape[-1]).astype(w_ref.dtype)

    bias = b_ref[...]                                        # (1, 2*Cout), f32
    for py in range(2):                                      # output-row phase
        acc = jnp.dot(t2, w_ref[py], preferred_element_type=jnp.float32) + bias
        o_ref[:, py:py + 1] = acc.reshape(th, 1, w_out, -1).astype(o_ref.dtype)


def upsample_forward(x_nchw, weight=None, bias=None, *, use_conv=True,
                     row_tile=32, compute_dtype=jnp.bfloat16):
    """Equivalent of Upsample(channels, use_conv, dims=2, padding=1).forward.

    x_nchw : (N, C, H, W); weight : (Cout, C, 3, 3) OIHW; bias : (Cout,)
    returns (N, Cout, 2H, 2W)
    """
    # TODO(synk): dims=1 / dims=3 variants of the module are not implemented here.
    N, C, H, W = x_nchw.shape

    if not use_conv:
        # TODO(synk): no-conv path is pure nearest-neighbour data movement; no kernel needed.
        return jnp.repeat(jnp.repeat(x_nchw, 2, axis=2), 2, axis=3)

    assert weight is not None and bias is not None, "use_conv=True requires weight/bias"
    Cout = weight.shape[0]
    assert weight.shape == (Cout, C, 3, 3)

    TH = max(1, min(row_tile, H))
    nT = -(-H // TH)
    Hpad = nT * TH
    Wp8 = _round_up(W + 2, 8)        # sublane-aligned padded width

    # Original-resolution NHWC input, zero padded by 1 (conv halo) on each side,
    # plus alignment padding, then pre-sliced into halo'd row tiles so plain
    # (non-overlapping) BlockSpecs can feed the pipelined grid.
    xc = jnp.transpose(x_nchw, (0, 2, 3, 1)).astype(compute_dtype)
    xpad = jnp.pad(xc, ((0, 0), (1, 1 + Hpad - H), (1, Wp8 - W - 1), (0, 0)))
    xt = jnp.stack([xpad[:, t * TH:t * TH + TH + 2] for t in range(nT)], axis=1)
    # xt: (N, nT, TH+2, Wp8, C)

    # Fold nearest-2x upsample into per-phase 3x3 tap weights.
    # sel[phase, tap, k] = 1 iff original kernel index k contributes to that tap.
    sel = jnp.array([[[1, 0, 0], [0, 1, 1], [0, 0, 0]],
                     [[0, 0, 0], [1, 1, 0], [0, 0, 1]]], jnp.float32)
    w32 = weight.astype(jnp.float32)
    # wf[py, dx, dy, cin, px, cout]
    wf = jnp.einsum('oikl,pdk,qel->pediqo', w32, sel, sel)
    wk = wf.reshape(2, 9 * C, 2 * Cout).astype(compute_dtype)
    bk = jnp.concatenate([bias, bias]).reshape(1, 2 * Cout).astype(jnp.float32)

    out_dtype = x_nchw.dtype
    itm = jnp.dtype(compute_dtype).itemsize
    in_block = (TH + 2) * Wp8 * max(C, 128) * itm
    out_block = TH * 2 * W * max(2 * Cout, 128) * jnp.dtype(out_dtype).itemsize
    w_bytes = wk.size * wk.dtype.itemsize + bk.size * 4
    est = 2 * (in_block + out_block) + w_bytes + (1 << 20)
    vmem_limit = int(min(max(2 * est, 16 << 20), 48 << 20))   # fits v7x's 64 MiB VMEM

    out5 = pl.pallas_call(
        _upsample_conv_kernel,
        out_shape=jax.ShapeDtypeStruct((N, Hpad, 2, W, 2 * Cout), out_dtype),
        grid_spec=pltpu.PrefetchScalarGridSpec(
            num_scalar_prefetch=0,
            grid=(N, nT),
            in_specs=[
                pl.BlockSpec((None, None, TH + 2, Wp8, C),
                             lambda n, t: (n, t, 0, 0, 0)),
                pl.BlockSpec((2, 9 * C, 2 * Cout), lambda n, t: (0, 0, 0)),
                pl.BlockSpec((1, 2 * Cout), lambda n, t: (0, 0)),
            ],
            out_specs=pl.BlockSpec((None, TH, 2, W, 2 * Cout),
                                   lambda n, t: (n, t, 0, 0, 0)),
        ),
        compiler_params=pltpu.CompilerParams(
            dimension_semantics=("parallel", "parallel"),
            vmem_limit_bytes=vmem_limit),
    )(xt, wk, bk)

    # (N, Hpad, 2, W, 2*Cout) -> (N, 2*Hpad, 2*W, Cout): free adjacent-dim reshape.
    out_nhwc = out5.reshape(N, 2 * Hpad, 2 * W, Cout)[:, :2 * H]
    return jnp.transpose(out_nhwc, (0, 3, 1, 2))              # module contract: NCHW


if __name__ == "__main__":
    key = jax.random.PRNGKey(0)
    k1, k2, k3 = jax.random.split(key, 3)

    # Small shapes consistent with the module: channels=4, use_conv=True, dims=2
    N, C, H, W = 2, 4, 16, 16
    Cout = C

    x = jax.random.normal(k1, (N, C, H, W), jnp.float32)
    weight = 0.1 * jax.random.normal(k2, (Cout, C, 3, 3), jnp.float32)
    bias = 0.1 * jax.random.normal(k3, (Cout,), jnp.float32)

    # Pure-JAX reference: nearest 2x upsample + SAME 3x3 cross-correlation conv.
    xu = jnp.repeat(jnp.repeat(x, 2, axis=2), 2, axis=3)
    ref = lax.conv_general_dilated(
        xu, weight, window_strides=(1, 1), padding=((1, 1), (1, 1)),
        dimension_numbers=("NCHW", "OIHW", "NCHW"),
        precision=lax.Precision.HIGHEST) + bias[None, :, None, None]

    # f32 compute path: tight tolerance proves the phase-conv decomposition.
    fwd_f32 = jax.jit(lambda a, w, b: upsample_forward(
        a, w, b, use_conv=True, row_tile=8, compute_dtype=jnp.float32))
    out = jax.block_until_ready(fwd_f32(x, weight, bias))
    assert out.shape == (N, Cout, 2 * H, 2 * W), out.shape
    err = float(jnp.max(jnp.abs(out - ref)))
    assert err < 2e-3, f"f32 max abs error {err}"

    # bf16 matmul-input path (default; v5e/v6e perf item), f32 accumulation.
    fwd_bf16 = jax.jit(lambda a, w, b: upsample_forward(
        a, w, b, use_conv=True, row_tile=8, compute_dtype=jnp.bfloat16))
    out_bf = jax.block_until_ready(fwd_bf16(x, weight, bias))
    err_bf = float(jnp.max(jnp.abs(out_bf - ref)))
    assert err_bf < 5e-2, f"bf16 max abs error {err_bf}"

    print("KERNEL_OK")
</pallas_src>

<mosaic_0001>
module attributes {stable_mosaic.version = 11 : i64} {
  func.func @_upsample_conv_kernel(%arg0: i32, %arg1: i32, %arg2: memref<1x1x10x24x4xf32, #tpu.memory_space<vmem>>, %arg3: memref<2x36x8xf32, #tpu.memory_space<vmem>>, %arg4: memref<1x8xf32, #tpu.memory_space<vmem>>, %arg5: memref<1x8x2x16x8xf32, #tpu.memory_space<vmem>>) attributes {dimension_semantics = [#tpu.dimension_semantics<parallel>, #tpu.dimension_semantics<parallel>], iteration_bounds = array<i64: 2, 2>, scalar_prefetch = 0 : i64, scratch_operands = 0 : i64, tpu.core_type = #tpu.core_type<tc>, window_params = [{transform_indices = @transform_0, window_bounds = array<i64: 1, 1, 10, 24, 4>}, {pipeline_mode = #tpu.pipeline_mode<synchronous>, transform_indices = @transform_1, window_bounds = array<i64: 2, 36, 8>}, {pipeline_mode = #tpu.pipeline_mode<synchronous>, transform_indices = @transform_2, window_bounds = array<i64: 1, 8>}, {transform_indices = @transform_3, window_bounds = array<i64: 1, 8, 2, 16, 8>}]} {
    %c0 = arith.constant 0 : index
    %c0_0 = arith.constant 0 : index
    %c0_1 = arith.constant 0 : index
    %c0_2 = arith.constant 0 : index
    %c0_3 = arith.constant 0 : index
    %0 = vector.load %arg2[%c0, %c0_0, %c0_1, %c0_2, %c0_3] : memref<1x1x10x24x4xf32, #tpu.memory_space<vmem>>, vector<1x1x10x24x4xf32>
    %1 = vector.shape_cast %0 : vector<1x1x10x24x4xf32> to vector<10x24x4xf32>
    %2 = vector.extract_strided_slice %1 {offsets = [0, 0, 0], sizes = [8, 16, 4], strides = [1, 1, 1]} : vector<10x24x4xf32> to vector<8x16x4xf32>
    %3 = vector.extract_strided_slice %1 {offsets = [1, 0, 0], sizes = [8, 16, 4], strides = [1, 1, 1]} : vector<10x24x4xf32> to vector<8x16x4xf32>
    %4 = vector.extract_strided_slice %1 {offsets = [2, 0, 0], sizes = [8, 16, 4], strides = [1, 1, 1]} : vector<10x24x4xf32> to vector<8x16x4xf32>
    %5 = vector.extract_strided_slice %1 {offsets = [0, 1, 0], sizes = [8, 16, 4], strides = [1, 1, 1]} : vector<10x24x4xf32> to vector<8x16x4xf32>
    %6 = vector.extract_strided_slice %1 {offsets = [1, 1, 0], sizes = [8, 16, 4], strides = [1, 1, 1]} : vector<10x24x4xf32> to vector<8x16x4xf32>
    %7 = vector.extract_strided_slice %1 {offsets = [2, 1, 0], sizes = [8, 16, 4], strides = [1, 1, 1]} : vector<10x24x4xf32> to vector<8x16x4xf32>
    %8 = vector.extract_strided_slice %1 {offsets = [0, 2, 0], sizes = [8, 16, 4], strides = [1, 1, 1]} : vector<10x24x4xf32> to vector<8x16x4xf32>
    %9 = vector.extract_strided_slice %1 {offsets = [1, 2, 0], sizes = [8, 16, 4], strides = [1, 1, 1]} : vector<10x24x4xf32> to vector<8x16x4xf32>
    %10 = vector.extract_strided_slice %1 {offsets = [2, 2, 0], sizes = [8, 16, 4], strides = [1, 1, 1]} : vector<10x24x4xf32> to vector<8x16x4xf32>
    %11 = tpu.concatenate %2, %3, %4, %5, %6, %7, %8, %9, %10 in 2 : vector<8x16x4xf32>, vector<8x16x4xf32>, vector<8x16x4xf32>, vector<8x16x4xf32>, vector<8x16x4xf32>, vector<8x16x4xf32>, vector<8x16x4xf32>, vector<8x16x4xf32>, vector<8x16x4xf32> -> vector<8x16x36xf32>
    %12 = vector.shape_cast %11 : vector<8x16x36xf32> to vector<128x36xf32>
    %c0_4 = arith.constant 0 : index
    %c0_5 = arith.constant 0 : index
    %13 = vector.load %arg4[%c0_4, %c0_5] : memref<1x8xf32, #tpu.memory_space<vmem>>, vector<1x8xf32>
    %c0_6 = arith.constant 0 : index
    %c0_7 = arith.constant 0 : index
    %c0_8 = arith.constant 0 : index
    %14 = vector.load %arg3[%c0_6, %c0_7, %c0_8] : memref<2x36x8xf32, #tpu.memory_space<vmem>>, vector<1x36x8xf32>
    %15 = vector.shape_cast %14 : vector<1x36x8xf32> to vector<36x8xf32>
    %cst = arith.constant dense<0.000000e+00> : vector<128x8xf32>
    %16 = tpu.matmul %12, %15, %cst {dimension_numbers = #tpu.dot_dimension_numbers<[1], [0], [0], [1], [0, 0, 1, 1], [], []>} : vector<128x36xf32>, vector<36x8xf32>, vector<128x8xf32> -> vector<128x8xf32>
    %17 = vector.broadcast %13 : vector<1x8xf32> to vector<128x8xf32>
    %18 = arith.addf %16, %17 : vector<128x8xf32>
    %19 = vector.shape_cast %18 : vector<128x8xf32> to vector<8x1x16x8xf32>
    %c0_9 = arith.constant 0 : index
    %c0_10 = arith.constant 0 : index
    %c0_11 = arith.constant 0 : index
    %c0_12 = arith.constant 0 : index
    %c0_13 = arith.constant 0 : index
    %20 = vector.load %arg5[%c0_9, %c0_10, %c0_11, %c0_12, %c0_13] : memref<1x8x2x16x8xf32, #tpu.memory_space<vmem>>, vector<1x8x1x16x8xf32>
    %21 = vector.shape_cast %20 : vector<1x8x1x16x8xf32> to vector<8x1x16x8xf32>
    %22 = vector.shape_cast %19 : vector<8x1x16x8xf32> to vector<1x8x1x16x8xf32>
    tpu.vector_store %arg5[%c0_9, %c0_10, %c0_11, %c0_12, %c0_13], %22 {strides = array<i32>} : memref<1x8x2x16x8xf32, #tpu.memory_space<vmem>>, vector<1x8x1x16x8xf32>,
    %c1 = arith.constant 1 : index
    %c0_14 = arith.constant 0 : index
    %c0_15 = arith.constant 0 : index
    %23 = vector.load %arg3[%c1, %c0_14, %c0_15] : memref<2x36x8xf32, #tpu.memory_space<vmem>>, vector<1x36x8xf32>
    %24 = vector.shape_cast %23 : vector<1x36x8xf32> to vector<36x8xf32>
    %cst_16 = arith.constant dense<0.000000e+00> : vector<128x8xf32>
    %25 = tpu.matmul %12, %24, %cst_16 {dimension_numbers = #tpu.dot_dimension_numbers<[1], [0], [0], [1], [0, 0, 1, 1], [], []>} : vector<128x36xf32>, vector<36x8xf32>, vector<128x8xf32> -> vector<128x8xf32>
    %26 = vector.broadcast %13 : vector<1x8xf32> to vector<128x8xf32>
    %27 = arith.addf %25, %26 : vector<128x8xf32>
    %28 = vector.shape_cast %27 : vector<128x8xf32> to vector<8x1x16x8xf32>
    %c0_17 = arith.constant 0 : index
    %c0_18 = arith.constant 0 : index
    %c1_19 = arith.constant 1 : index
    %c0_20 = arith.constant 0 : index
    %c0_21 = arith.constant 0 : index
    %29 = vector.load %arg5[%c0_17, %c0_18, %c1_19, %c0_20, %c0_21] : memref<1x8x2x16x8xf32, #tpu.memory_space<vmem>>, vector<1x8x1x16x8xf32>
    %30 = vector.shape_cast %29 : vector<1x8x1x16x8xf32> to vector<8x1x16x8xf32>
    %31 = vector.shape_cast %28 : vector<8x1x16x8xf32> to vector<1x8x1x16x8xf32>
    tpu.vector_store %arg5[%c0_17, %c0_18, %c1_19, %c0_20, %c0_21], %31 {strides = array<i32>} : memref<1x8x2x16x8xf32, #tpu.memory_space<vmem>>, vector<1x8x1x16x8xf32>,
    return
  }
  func.func @transform_0(%arg0: i32, %arg1: i32) -> (i32, i32, i32, i32, i32) {
    %c0_i32 = arith.constant 0 : i32
    %c0_i32_0 = arith.constant 0 : i32
    %c0_i32_1 = arith.constant 0 : i32
    %c0_i32_2 = arith.constant 0 : i32
    return %arg0, %arg1, %c0_i32, %c0_i32_0, %c0_i32_1 : i32, i32, i32, i32, i32
  }
  func.func @transform_1(%arg0: i32, %arg1: i32) -> (i32, i32, i32) {
    %c0_i32 = arith.constant 0 : i32
    %c0_i32_0 = arith.constant 0 : i32
    %c0_i32_1 = arith.constant 0 : i32
    %c0_i32_2 = arith.constant 0 : i32
    return %c0_i32, %c0_i32_0, %c0_i32_1 : i32, i32, i32
  }
  func.func @transform_2(%arg0: i32, %arg1: i32) -> (i32, i32) {
    %c0_i32 = arith.constant 0 : i32
    %c0_i32_0 = arith.constant 0 : i32
    %c0_i32_1 = arith.constant 0 : i32
    return %c0_i32, %c0_i32_0 : i32, i32
  }
  func.func @transform_3(%arg0: i32, %arg1: i32) -> (i32, i32, i32, i32, i32) {
    %c0_i32 = arith.constant 0 : i32
    %c0_i32_0 = arith.constant 0 : i32
    %c0_i32_1 = arith.constant 0 : i32
    %c0_i32_2 = arith.constant 0 : i32
    return %arg0, %arg1, %c0_i32, %c0_i32_0, %c0_i32_1 : i32, i32, i32, i32, i32
  }
}

</mosaic_0001>

<bundles_post_ra>
// kernel: _lambda_.1
= control target key start
LH: loop header
LB: loop body
LE: loop exit
PB: predicated region body
PF: predicated region fallthrough
CT: control target
= control target key end

     0   :  { %s1421_s12 = smov 0   ;;  %s1423_s13 = smov 0   ;;  %s2411_s0 = inlined_call_operand.vmem [shape: f32[2,2,10,24,4], index: 0, kind: input, shape index: {}]   ;;  %s2412_s1 = inlined_call_operand.vmem [shape: f32[2,36,8], index: 1, kind: input, shape index: {}]   ;;  %s2413_s2 = inlined_call_operand.vmem [shape: f32[1,8], index: 2, kind: input, shape index: {}]   ;;  %s2414_s3 = inlined_call_operand.vmem [shape: f32[2,16,2,16,8], index: 3, kind: output, shape index: {}]  }
   0x1   :  { %s1425_s14 = smov 0   ;;  %s1427_s15 = smov 0  }
   0x2   :  { %s1429_s16 = smov 0  }
   0x3 LB: > { %s22_s17 = sadd.s32 1, %s1383_s14  ;;  %s25_s18 = sadd.s32 1, %s1387_s15  ;;  %s1391_s16 = sphi %s1429_s16, %s13_s16   ;;  %s1387_s15 = sphi %s1427_s15, %s2455_s15   ;;  %s1383_s14 = sphi %s1425_s14, %s2454_s14   ;;  %s1379_s13 = sphi %s1423_s13, %s2453_s13   ;;  %s1375_s12 = sphi %s1421_s12, %s2452_s12  }
   0x4   : > { %p23_p0 = scmp.ge.s32.totalorder %s22_s17, 2  ;;  %p1229_p1 = scmp.ge.s32.totalorder %s1391_s16, 1 }
   0x5   : > { %p157_p2 = scmp.lt.s32.totalorder %s1391_s16, 5 }
   0x6   : > { %s2457_s17 = smov (%p23_p0, %s22_s17), 0  ;;  %s2459_s18 = smov (!%p23_p0, %s25_s18), %s1387_s15 }
   0x7   : > { %p158_p3 = pnand %p1229_p1, %p157_p2  ;;  %p27_p4 = scmp.ge.s32.totalorder %s2459_s18, 2 }
   0x9   : > { %s2461_s18 = smov (%p27_p4, %s2459_s18), 0  ;;  %161 = sbr.rel (%p158_p3) target bundleno = 609 (0x261), region = 32 }
   0xe   : > { %p190_p5 = scmp.lt.s32.totalorder %s1379_s13, 1  ;;  %p192_p6 = scmp.lt.s32.totalorder %s1375_s12, 1  ;;  %vm364_vm0 = vcmask 1046528   ;;  %vm756_vm1 = vcmask 31744   ;;  %vm773_vm2 = vcmask 64512   ;;  %vm561_vm3 = vcmask 1045504  }
   0xf   : > { %s1393_s27 = smov 4   ;;  %s1394_s28 = smov 8   ;;  %vm790_vm4 = vcmask 97280   ;;  %vm950_vm5 = vcmask 1043456   ;;  %vm807_vm6 = vcmask 130048   ;;  %vm824_vm7 = vcmask 162816  }
  0x10   : > { %s2463_s13 = smov (!%p190_p5, %s1379_s13), 1  ;;  %s1395_s29 = smov 12   ;;  %vm841_vm8 = vcmask 195584   ;;  %vm858_vm9 = vcmask 228352   ;;  %vm875_vm10 = vcmask 261120   ;;  %vm901_vm11 = vcmask 293888  }
  0x11   : > { %s193_s19 = scalar_select %p192_p6, %s1375_s12, 1 }
  0x12   : > { %s1303_s20 = smul.u32 60, %s2463_s13  ;;  %s1396_s30 = smov 16  }
  0x13   : > { %s1302_s21 = smul.u32 30, %s193_s19  ;;  %s1397_s4 = smov 24  }
  0x14   : > { %s1398_s5 = smov 28   ;;  %s1399_s6 = smov 20  }
  0x15   : > { %s196_s22 = sadd.s32 %s1303_s20, %s1302_s21  ;;  %s1400_s7 = smov 32  }
  0x16   : > { %s1230_s23 = sshll.u32 %s196_s22, 3 }
  0x17   : > { %s1461_s26 = scalar_lea.vmem %s2411_s0, %s1230_s23 }
  0x18   : > { %v1464_v0 = vld [vmem:[%s1461_s26 + $0x48] sm:$0xff]  ;;  %v1467_v1 = vld [vmem:[%s1461_s26 + $0x30] sm:$0xff]  ;;  %v1470_v2 = vld [vmem:[%s1461_s26 + $0x18] sm:$0xff] }
  0x19   : > { %264 = vrot.lane.b32.xlu2 %v1464_v0, %s1393_s27  ;;  %260 = vrot.lane.b32.xlu1 %v1467_v1, %s1393_s27  ;;  %v1479_v3 = vld [vmem:[%s1461_s26 + $0x50] sm:$0xff]  ;;  %v1482_v4 = vld [vmem:[%s1461_s26 + $0x38] sm:$0xff]  ;;  %v370_v25 = vrot.slane %v1470_v2, 1  ;;  %v380_v35 = vrot.slane %v1464_v0, 1  ;;  %v375_v38 = vrot.slane %v1467_v1, 1 }
  0x1a   : > { %256 = vrot.lane.b32.xlu0 %v1470_v2, %s1393_s27  ;;  %v1485_v5 = vld [vmem:[%s1461_s26 + $0x20] sm:$0xff]  ;;  %v1494_v6 = vld [vmem:[%s1461_s26 + $0x78] sm:$0xff]  ;;  %v1497_v7 = vld [vmem:[%s1461_s26 + $0x68] sm:$0xff]  ;;  %v376_v33 = vrot.slane %v1482_v4, 1  ;;  %v381_v36 = vrot.slane %v1479_v3, 1 }
  0x1b   : > { %v1500_v8 = vld [vmem:[%s1461_s26 + $0x60] sm:$0xff]  ;;  %v1509_v9 = vld [vmem:[%s1461_s26 + $0x98] sm:$0xff]  ;;  %v1512_v10 = vld [vmem:[%s1461_s26 + $0x90] sm:$0xff]  ;;  %v371_v26 = vrot.slane %v1485_v5, 1  ;;  %v386_v45 = vrot.slane %v1497_v7, 1  ;;  %v390_v58 = vrot.slane %v1494_v6, 1 }
  0x1c   : > { %v1515_v11 = vld [vmem:[%s1461_s26 + $0x80] sm:$0xff]  ;;  %v1527_v13 = vld [vmem:[%s1461_s26 + $0xb0] sm:$0xff]  ;;  %v1530_v14 = vld [vmem:[%s1461_s26 + $0xa8] sm:$0xff]  ;;  %v1611_v40 = vsel %vm364_vm0, %v380_v35, %v381_v36  ;;  %v1614_v41 = vsel %vm364_vm0, %v375_v38, %v376_v33  ;;  %v385_v44 = vrot.slane %v1500_v8, 1  ;;  %v395_v55 = vrot.slane %v1512_v10, 1 }
  0x1d   : > { %v1524_v12 = vld [vmem:[%s1461_s26 + $0xc0] sm:$0xff]  ;;  %v1539_v15 = vld [vmem:[%s1461_s26 + $0xc8] sm:$0xff]  ;;  %v1570_v22 = vld [vmem:[%s1461_s26 + $0xd8] sm:$0xff]  ;;  %v1586_v29 = vsel %vm364_vm0, %v370_v25, %v371_v26  ;;  %v391_v53 = vrot.slane %v1515_v11, 1  ;;  %v396_v56 = vrot.slane %v1509_v9, 1 }
  0x1e   : > { %2432 = vst [vmem:[#allocation2_spill] sm:$0xff] %v1524_v12  ;;  %v1555_v16 = vld [vmem:[%s1461_s26] sm:$0xff]  ;;  %v1558_v17 = vld [vmem:[%s1461_s26 + $0x8] sm:$0xff]  ;;  %v1576_v24 = vld [vmem:[%s1461_s26 + $0x10] sm:$0xff]  ;;  %v1635_v49 = vsel %vm364_vm0, %v385_v44, %v386_v45  ;;  %v582_v44 = vrot.slane %v1500_v8, 2 }
  0x1f   : > { %2433 = vst [vmem:[#allocation3_spill] sm:$0xff] %v1539_v15  ;;  %v365_v18 = vrot.slane %v1555_v16, 1  ;;  %v366_v19 = vrot.slane %v1558_v17, 1  ;;  %v1566_v20 = vld [vmem:[%s1461_s26 + $0xe0] sm:$0xff]  ;;  %v1573_v23 = vld [vmem:[%s1461_s26 + $0x28] sm:$0xff]  ;;  %v368_v28 = vrot.slane %v1576_v24, 1  ;;  %v1663_v60 = vsel %vm364_vm0, %v395_v55, %v396_v56 }
  0x20   : > { %2434 = vst [vmem:[#allocation4_spill] sm:$0xff] %v1566_v20  ;;  %v373_v27 = vrot.slane %v1573_v23, 1  ;;  %v1593_v32 = vld [vmem:[%s1461_s26 + $0x40] sm:$0xff]  ;;  %v1617_v42 = vld [vmem:[%s1461_s26 + $0x70] sm:$0xff]  ;;  %v1620_v43 = vld [vmem:[%s1461_s26 + $0x58] sm:$0xff]  ;;  %v1666_v61 = vsel %vm364_vm0, %v390_v58, %v391_v53 }
  0x21   : > { %266 = vrot.lane.b32.xlu2 %v1479_v3, %s1393_s27  ;;  %262 = vrot.lane.b32.xlu1 %v1482_v4, %s1393_s27  ;;  %v367_v21 = vsel %vm364_vm0, %v365_v18, %v366_v19  ;;  %2435 = vst [vmem:[#allocation5_spill] sm:$0xff] %v1570_v22  ;;  %v369_v31 = vsel %vm364_vm0, %v366_v19, %v368_v28  ;;  %v378_v34 = vrot.slane %v1593_v32, 1  ;;  %v388_v46 = vrot.slane %v1617_v42, 1  ;;  %v1644_v52 = vld [vmem:[%s1461_s26 + $0x88] sm:$0xff]  ;;  %v1669_v62 = vld [vmem:[%s1461_s26 + $0xb8] sm:$0xff] }
  0x22   : > { %258 = vrot.lane.b32.xlu0 %v1485_v5, %s1393_s27  ;;  %v1589_v30 = vsel %vm364_vm0, %v371_v26, %v373_v27  ;;  %2436 = vst [vmem:[#allocation6_spill] sm:$0xff] %v1620_v43  ;;  %v383_v48 = vrot.slane %v1620_v43, 1  ;;  %v393_v54 = vrot.slane %v1644_v52, 1  ;;  %v1672_v63 = vld [vmem:[%s1461_s26 + $0xa0] sm:$0xff]  ;;  %v400_v18 = vrot.slane %v1530_v14, 1 }
  0x23   : > { %v1608_v39 = vsel %vm364_vm0, %v376_v33, %v378_v34  ;;  %2437 = vst [vmem:[#allocation7_spill] sm:$0xff] %v1635_v49  ;;  %v1638_v50 = vsel %vm364_vm0, %v386_v45, %v388_v46  ;;  %v401_v19 = vrot.slane %v1527_v13, 1  ;;  %v398_v27 = vrot.slane %v1672_v63, 1 }
  0x24   : > { %2438 = vst [vmem:[#allocation8_spill] sm:$0xff] %v1638_v50  ;;  %v1641_v51 = vsel %vm364_vm0, %v381_v36, %v383_v48  ;;  %v1660_v59 = vsel %vm364_vm0, %v391_v53, %v393_v54  ;;  %v583_v45 = vrot.slane %v1497_v7, 2  ;;  %v587_v46 = vrot.slane %v1494_v6, 2 }
  0x25   : > { %2439 = vst [vmem:[#allocation9_spill] sm:$0xff] %v1660_v59  ;;  %v1697_v34 = vsel %vm364_vm0, %v396_v56, %v398_v27  ;;  %v588_v48 = vrot.slane %v1515_v11, 2  ;;  %v592_v27 = vrot.slane %v1512_v10, 2  ;;  %v585_v43 = vrot.slane %v1617_v42, 2 }
  0x26   : > { %2440 = vst [vmem:[#allocation10_spill] sm:$0xff] %v1666_v61 }
  0x27   : > { %v1730_v58 = vsel %vm561_vm3, %v587_v46, %v588_v48 }
  0x29   : > { %272 = vrot.lane.b32.xlu2 %v1494_v6, %s1393_s27  ;;  %270 = vrot.lane.b32.xlu1 %v1497_v7, %s1393_s27 }
  0x2a   : > { %268 = vrot.lane.b32.xlu0 %v1500_v8, %s1393_s27 }
  0x31   : > { %278 = vrot.lane.b32.xlu2 %v1509_v9, %s1393_s27  ;;  %276 = vrot.lane.b32.xlu1 %v1512_v10, %s1393_s27 }
  0x32   : > { %274 = vrot.lane.b32.xlu0 %v1515_v11, %s1393_s27 }
  0x39   : > { %284 = vrot.lane.b32.xlu2 %v1524_v12, %s1393_s27  ;;  %282 = vrot.lane.b32.xlu1 %v1527_v13, %s1393_s27 }
  0x3a   : > { %280 = vrot.lane.b32.xlu0 %v1530_v14, %s1393_s27 }
  0x41   : > { %308 = vrot.lane.b32.xlu2 %v1482_v4, %s1394_s28  ;;  %306 = vrot.lane.b32.xlu1 %v1467_v1, %s1394_s28 }
  0x42   : > { %286 = vrot.lane.b32.xlu0 %v1539_v15, %s1393_s27 }
  0x49   : > { %314 = vrot.lane.b32.xlu2 %v1500_v8, %s1394_s28  ;;  %312 = vrot.lane.b32.xlu1 %v1479_v3, %s1394_s28 }
  0x4a   : > { %310 = vrot.lane.b32.xlu0 %v1464_v0, %s1394_s28 }
  0x51   : > { %320 = vrot.lane.b32.xlu2 %v1515_v11, %s1394_s28  ;;  %318 = vrot.lane.b32.xlu1 %v1494_v6, %s1394_s28 }
  0x52   : > { %316 = vrot.lane.b32.xlu0 %v1497_v7, %s1394_s28 }
  0x59   : > { %326 = vrot.lane.b32.xlu2 %v1530_v14, %s1394_s28  ;;  %324 = vrot.lane.b32.xlu1 %v1509_v9, %s1394_s28 }
  0x5a   : > { %322 = vrot.lane.b32.xlu0 %v1512_v10, %s1394_s28 }
  0x61   : > { %332 = vrot.lane.b32.xlu2 %v1539_v15, %s1394_s28  ;;  %330 = vrot.lane.b32.xlu1 %v1524_v12, %s1394_s28 }
  0x62   : > { %328 = vrot.lane.b32.xlu0 %v1527_v13, %s1394_s28 }
  0x69   : > { %336 = vrot.lane.b32.xlu1 %v1566_v20, %s1394_s28  ;;  %405 = vrot.lane.b32.xlu2 %v367_v21, %s1395_s29  ;;  %v403_v21 = vrot.slane %v1669_v62, 1 }
  0x6a   : > { %334 = vrot.lane.b32.xlu0 %v1570_v22, %s1394_s28 }
  0x6b   : > { %v1694_v33 = vsel %vm364_vm0, %v401_v19, %v403_v21 }
  0x71   : > { %409 = vrot.lane.b32.xlu1 %v1586_v29, %s1395_s29  ;;  %411 = vrot.lane.b32.xlu2 %v1589_v30, %s1395_s29 }
  0x72   : > { %407 = vrot.lane.b32.xlu0 %v369_v31, %s1395_s29  ;;  %v1691_v31 = vsel %vm364_vm0, %v400_v18, %v401_v19 }
  0x73   : > { %v1604_v37 = vpop.permute.xlu2 %264 }
  0x74   : > { %v761_v18 = vsel %vm756_vm1, %v1467_v1, %v1604_v37  ;;  %v567_v37 = vrot.slane %v1470_v2, 2 }
  0x79   : > { %415 = vrot.lane.b32.xlu1 %v1608_v39, %s1395_s29  ;;  %417 = vrot.lane.b32.xlu2 %v1611_v40, %s1395_s29 }
  0x7a   : > { %413 = vrot.lane.b32.xlu0 %v1614_v41, %s1395_s29 }
  0x7b   : > { %v1631_v47 = vpop.permute.xlu2 %266 }
  0x81   : > { %421 = vrot.lane.b32.xlu1 %v1635_v49, %s1395_s29  ;;  %423 = vrot.lane.b32.xlu2 %v1638_v50, %s1395_s29  ;;  %v563_v50 = vrot.slane %v1558_v17, 2 }
  0x82   : > { %419 = vrot.lane.b32.xlu0 %v1641_v51, %s1395_s29 }
  0x83   : > { %v1656_v57 = vpop.permute.xlu2 %272 }
  0x89   : > { %427 = vrot.lane.b32.xlu1 %v1660_v59, %s1395_s29  ;;  %429 = vrot.lane.b32.xlu2 %v1663_v60, %s1395_s29 }
  0x8a   : > { %425 = vrot.lane.b32.xlu0 %v1666_v61, %s1395_s29 }
  0x8b   : > { %v1683_v25 = vpop.permute.xlu2 %278  ;;  %v1685_v26 = vpop.permute.xlu1 %260 }
  0x8c   : > { %v1688_v28 = vpop.permute.xlu0 %256 }
  0x91   : > { %433 = vrot.lane.b32.xlu1 %v1691_v31, %s1395_s29  ;;  %435 = vrot.lane.b32.xlu2 %v1694_v33, %s1395_s29 }
  0x92   : > { %431 = vrot.lane.b32.xlu0 %v1697_v34, %s1395_s29 }
  0x93   : > { %v1705_v35 = vpop.permute.xlu2 %284  ;;  %v1707_v36 = vpop.permute.xlu1 %262 }
  0x94   : > { %v259_v38 = vpop.permute.xlu0 %258 }
  0x95   : > { %v758_v53 = vsel %vm756_vm1, %v1558_v17, %v259_v38  ;;  %v593_v38 = vrot.slane %v1509_v9, 2  ;;  %v572_v17 = vrot.slane %v1467_v1, 2 }
  0x99   : > { %461 = vrot.lane.b32.xlu1 %v1589_v30, %s1396_s30  ;;  %475 = vrot.lane.b32.xlu2 %v1666_v61, %s1396_s30  ;;  %v562_v61 = vrot.slane %v1555_v16, 2 }
  0x9a   : > { %459 = vrot.lane.b32.xlu0 %v1586_v29, %s1396_s30  ;;  %v1727_v29 = vsel %vm561_vm3, %v582_v44, %v583_v45 }
  0x9b   : > { %v309_v54 = vpop.permute.xlu2 %308  ;;  %v271_v30 = vpop.permute.xlu1 %270  ;;  %2441 = vst [vmem:[#allocation11_spill] sm:$0xff] %v1727_v29  ;;  %v564_v22 = vsel %vm561_vm3, %v562_v61, %v563_v50 }
  0x9c   : > { %v1722_v55 = vsel %vm773_vm2, %v758_v53, %v309_v54  ;;  %v1724_v56 = vpop.permute.xlu0 %268  ;;  %v1749_v53 = vsel %vm561_vm3, %v592_v27, %v593_v38  ;;  %v568_v54 = vrot.slane %v1485_v5, 2 }
  0x9e   : > { %v1769_v49 = vsel %vm561_vm3, %v567_v37, %v568_v54  ;;  %v757_v37 = vsel %vm756_vm1, %v1555_v16, %v1688_v28  ;;  %v1799_v16 = vsel %vm561_vm3, %v583_v45, %v585_v43  ;;  %v595_v43 = vrot.slane %v1672_v63, 2 }
  0x9f   : > { %v759_v45 = vsel %vm756_vm1, %v1470_v2, %v1685_v26  ;;  %v570_v2 = vrot.slane %v1573_v23, 2 }
  0xa1   : > { %618 = vrot.lane.b32.xlu1 %v1727_v29, %s1397_s4  ;;  %671 = vrot.lane.b32.xlu2 %v1730_v58, %s1398_s5 }
  0xa2   : > { %529 = vrot.lane.b32.xlu0 %v1663_v60, %s1399_s6 }
  0xa3   : > { %v315_v19 = vpop.permute.xlu2 %314  ;;  %v277_v21 = vpop.permute.xlu1 %276 }
  0xa4   : > { %v1744_v44 = vsel %vm773_vm2, %v761_v18, %v315_v19  ;;  %v1746_v46 = vpop.permute.xlu0 %274  ;;  %v764_v18 = vsel %vm756_vm1, %v1479_v3, %v271_v30  ;;  %v573_v30 = vrot.slane %v1482_v4, 2  ;;  %v767_v61 = vsel %vm756_vm1, %v1494_v6, %v277_v21 }
  0xa5   : > { %v760_v6 = vsel %vm756_vm1, %v1485_v5, %v1707_v36  ;;  %v1824_v5 = vsel %vm561_vm3, %v593_v38, %v595_v43  ;;  %v565_v36 = vrot.slane %v1576_v24, 2  ;;  %v762_v38 = vsel %vm756_vm1, %v1482_v4, %v1631_v47 }
  0xa6   : > { %v575_v4 = vrot.slane %v1593_v32, 2  ;;  %v766_v24 = vsel %vm756_vm1, %v1497_v7, %v1746_v46  ;;  %v597_v46 = vrot.slane %v1530_v14, 2 }
  0xa8   : > { %v1871_v32 = vsel %vm561_vm3, %v573_v30, %v575_v4 }
  0xa9   : > { %513 = vrot.lane.b32.xlu1 %v1614_v41, %s1399_s6  ;;  %477 = vrot.lane.b32.xlu2 %v1660_v59, %s1396_s30 }
  0xaa   : > { %724 = vrot.lane.b32.xlu0 %v1749_v53, %s1400_s7 }
  0xab   : > { %v321_v19 = vpop.permute.xlu2 %320  ;;  %v283_v27 = vpop.permute.xlu1 %282 }
  0xac   : > { %v1764_v29 = vsel %vm773_vm2, %v764_v18, %v321_v19  ;;  %v1766_v59 = vpop.permute.xlu0 %280  ;;  %v590_v18 = vrot.slane %v1644_v52, 2  ;;  %v1793_v52 = vsel %vm561_vm3, %v572_v17, %v573_v30  ;;  %v598_v30 = vrot.slane %v1527_v13, 2 }
  0xad   : > { %v769_v7 = vsel %vm756_vm1, %v1512_v10, %v1766_v59 }
  0xae   : > { %v1796_v12 = vsel %vm561_vm3, %v588_v48, %v590_v18  ;;  %v1895_v10 = vsel %vm561_vm3, %v597_v46, %v598_v30 }
  0xb1   : > { %531 = vrot.lane.b32.xlu1 %v1697_v34, %s1399_s6  ;;  %655 = vrot.lane.b32.xlu2 %v1769_v49, %s1398_s5 }
  0xb2   : > { %602 = vrot.lane.b32.xlu0 %v564_v22, %s1397_s4 }
  0xb3   : > { %v327_v19 = vpop.permute.xlu2 %326  ;;  %v307_v20 = vpop.permute.xlu1 %306 }
  0xb4   : > { %v1787_v15 = vsel %vm773_vm2, %v767_v61, %v327_v19  ;;  %v774_v1 = vsel %vm773_vm2, %v757_v37, %v307_v20  ;;  %v1790_v22 = vpop.permute.xlu0 %286  ;;  %v770_v20 = vsel %vm756_vm1, %v1509_v9, %v283_v27  ;;  %v763_v9 = vsel %vm756_vm1, %v1464_v0, %v1724_v56 }
  0xb5   : > { %v1846_v61 = vsel %vm561_vm3, %v568_v54, %v570_v2  ;;  %v566_v56 = vsel %vm561_vm3, %v563_v50, %v565_v36  ;;  %v765_v50 = vsel %vm756_vm1, %v1500_v8, %v1656_v57 }
  0xb9   : > { %708 = vrot.lane.b32.xlu1 %v1793_v52, %s1400_s7  ;;  %673 = vrot.lane.b32.xlu2 %v1796_v12, %s1398_s5 }
  0xba   : > { %620 = vrot.lane.b32.xlu0 %v1799_v16, %s1397_s4 }
  0xbb   : > { %v333_v42 = vpop.permute.xlu2 %332  ;;  %v313_v28 = vpop.permute.xlu1 %312 }
  0xbc   : > { %v1817_v48 = vsel %vm773_vm2, %v770_v20, %v333_v42  ;;  %v777_v21 = vsel %vm773_vm2, %v760_v6, %v313_v28  ;;  %v311_v17 = vpop.permute.xlu0 %310  ;;  %v768_v42 = vsel %vm756_vm1, %v1515_v11, %v1683_v25  ;;  %v772_v11 = vsel %vm756_vm1, %v1527_v13, %v1790_v22 }
  0xbd   : > { %v1821_v18 = vsel %vm773_vm2, %v759_v45, %v311_v17  ;;  %v771_v17 = vsel %vm756_vm1, %v1530_v14, %v1705_v35  ;;  %v577_v13 = vrot.slane %v1464_v0, 2  ;;  %v578_v22 = vrot.slane %v1479_v3, 2 }
  0xbf   : > { %v1937_v0 = vsel %vm561_vm3, %v577_v13, %v578_v22 }
  0xc1   : > { %515 = vrot.lane.b32.xlu1 %v1608_v39, %s1399_s6  ;;  %479 = vrot.lane.b32.xlu2 %v1663_v60, %s1396_s30 }
  0xc2   : > { %726 = vrot.lane.b32.xlu0 %v1824_v5, %s1400_s7 }
  0xc3   : > { %v319_v63 = vpop.permute.xlu1 %318  ;;  %v406_v26 = vpop.permute.xlu2 %405 }
  0xc4   : > { %v780_v60 = vsel %vm773_vm2, %v763_v9, %v319_v63  ;;  %v317_v27 = vpop.permute.xlu0 %316  ;;  %v1842_v37 = vsel %vm790_vm4, %v774_v1, %v406_v26 }
  0xc5   : > { %v779_v23 = vsel %vm773_vm2, %v762_v38, %v317_v27 }
  0xc9   : > { %533 = vrot.lane.b32.xlu1 %v1691_v31, %s1399_s6  ;;  %657 = vrot.lane.b32.xlu2 %v1846_v61, %s1398_s5 }
  0xca   : > { %604 = vrot.lane.b32.xlu0 %v566_v56, %s1397_s4 }
  0xcb   : > { %v325_v47 = vpop.permute.xlu1 %324  ;;  %v412_v19 = vpop.permute.xlu2 %411 }
  0xcc   : > { %v1862_v54 = vsel %vm773_vm2, %v766_v24, %v325_v47  ;;  %v323_v1 = vpop.permute.xlu0 %322  ;;  %v1865_v6 = vsel %vm790_vm4, %v777_v21, %v412_v19  ;;  %v1256_v47 = vld [vmem:[%s2412_s1 + $0x48] sm:$0xf]  ;;  %v896_v19 = vld [vmem:[%s2412_s1 + $0x18] sm:$0xff] }
  0xcd   : > { %v1868_v20 = vsel %vm773_vm2, %v765_v50, %v323_v1  ;;  %1297 = vmatpush.msk.msra.mxu3 %vm950_vm5, %v1256_v47  ;;  %v1255_v50 = vld [vmem:[%s2412_s1 + $0x40] sm:$0xff]  ;;  %1257 = vmatpush.msk.msra.mxu1 %vm950_vm5, %v1256_v47  ;;  %v895_v1 = vld [vmem:[%s2412_s1 + $0x10] sm:$0xff]  ;;  %v2446_v47 = vld [vmem:[#allocation5_spill] sm:$0xff] }
  0xce   : > { %v508_v3 = vrot.slane %v2446_v47, 1 }
  0xcf   : > { %1298 = vmatpush.msra.mxu3 %v1255_v50  ;;  %1056 = vmatpush.msra.mxu1 %v1255_v50 }
  0xd1   : > { %710 = vrot.lane.b32.xlu1 %v1871_v32, %s1400_s7  ;;  %675 = vrot.lane.b32.xlu2 %v1749_v53, %s1398_s5 }
  0xd2   : > { %622 = vrot.lane.b32.xlu0 %v1730_v58, %s1397_s4 }
  0xd3   : > { %v331_v8 = vpop.permute.xlu1 %330  ;;  %v418_v57 = vpop.permute.xlu2 %417 }
  0xd4   : > { %v786_v28 = vsel %vm773_vm2, %v769_v7, %v331_v8  ;;  %v329_v43 = vpop.permute.xlu0 %328  ;;  %v1889_v45 = vsel %vm790_vm4, %v780_v60, %v418_v57  ;;  %v894_v7 = vld [vmem:[%s2412_s1 + $0x8] sm:$0xff]  ;;  %v1253_v8 = vld [vmem:[%s2412_s1 + $0x30] sm:$0xff] }
  0xd5   : > { %v1892_v21 = vsel %vm773_vm2, %v768_v42, %v329_v43  ;;  %v2443_v42 = vld [vmem:[#allocation3_spill] sm:$0xff] }
  0xd9   : > { %463 = vrot.lane.b32.xlu1 %v1614_v41, %s1396_s30  ;;  %517 = vrot.lane.b32.xlu2 %v1611_v40, %s1399_s6 }
  0xda   : > { %728 = vrot.lane.b32.xlu0 %v1895_v10, %s1400_s7 }
  0xdb   : > { %v337_v59 = vpop.permute.xlu1 %336  ;;  %v1906_v25 = vpop.permute.xlu2 %423 }
  0xdc   : > { %v789_v2 = vsel %vm773_vm2, %v772_v11, %v337_v59  ;;  %v335_v41 = vpop.permute.xlu0 %334  ;;  %v893_v11 = vld [vmem:[%s2412_s1] sm:$0xff]  ;;  %v1252_v59 = vld [vmem:[%s2412_s1 + $0x28] sm:$0xff] }
  0xdd   : > { %v1913_v9 = vsel %vm773_vm2, %v771_v17, %v335_v41 }
  0xe1   : > { %606 = vrot.lane.b32.xlu1 %v1769_v49, %s1397_s4  ;;  %535 = vrot.lane.b32.xlu2 %v1694_v33, %s1399_s6 }
  0xe2   : > { %481 = vrot.lane.b32.xlu0 %v1697_v34, %s1396_s30  ;;  %v600_v34 = vrot.slane %v1669_v62, 2 }
  0xe3   : > { %v410_v14 = vpop.permute.xlu1 %409  ;;  %v430_v35 = vpop.permute.xlu2 %429 }
  0xe4   : > { %v1925_v63 = vsel %vm790_vm4, %v1821_v18, %v410_v14  ;;  %v408_v26 = vpop.permute.xlu0 %407  ;;  %v1928_v36 = vsel %vm790_vm4, %v786_v28, %v430_v35  ;;  %v1957_v4 = vsel %vm561_vm3, %v598_v30, %v600_v34  ;;  %v2442_v30 = vld [vmem:[#allocation2_spill] sm:$0xff]  ;;  %v455_v28 = vrot.slane %v2443_v42, 1 }
  0xe5   : > { %v1932_v49 = vsel %vm790_vm4, %v1722_v55, %v408_v26  ;;  %v2444_v14 = vld [vmem:[#allocation6_spill] sm:$0xff] }
  0xe6   : > { %v580_v35 = vrot.slane %v2444_v14, 2 }
  0xe9   : > { %624 = vrot.lane.b32.xlu1 %v1796_v12, %s1397_s4  ;;  %712 = vrot.lane.b32.xlu2 %v1937_v0, %s1400_s7 }
  0xea   : > { %659 = vrot.lane.b32.xlu0 %v1793_v52, %s1398_s5 }
  0xeb   : > { %v416_v18 = vpop.permute.xlu1 %415  ;;  %v436_v38 = vpop.permute.xlu2 %435 }
  0xec   : > { %v1947_v55 = vsel %vm790_vm4, %v779_v23, %v416_v18  ;;  %v414_v60 = vpop.permute.xlu0 %413  ;;  %v1950_v27 = vsel %vm790_vm4, %v789_v2, %v436_v38  ;;  %v651_v2 = vrot.slane %v2443_v42, 2  ;;  %v2049_v38 = vsel %vm561_vm3, %v578_v22, %v580_v35  ;;  %v2447_v22 = vld [vmem:[#allocation7_spill] sm:$0xff] }
  0xed   : > { %v1954_v56 = vsel %vm790_vm4, %v1744_v44, %v414_v60  ;;  %v897_v44 = vld [vmem:[%s2412_s1 + $0x20] sm:$0xf] }
  0xee   : > { %1292 = vmatpush.msk.msra.mxu2 %vm950_vm5, %v897_v44  ;;  %1235 = vmatpush.msk.msra.mxu0 %vm950_vm5, %v897_v44 }
  0xf0   : > { %1293 = vmatpush.msra.mxu2 %v896_v19  ;;  %966 = vmatpush.msra.mxu0 %v896_v19  ;;  %v236_v19 = vld [vmem:[%s1461_s26 + $0xd0] sm:$0xff] }
  0xf1   : > { %730 = vrot.lane.b32.xlu1 %v1957_v4, %s1400_s7  ;;  %465 = vrot.lane.b32.xlu2 %v1608_v39, %s1396_s30 }
  0xf2   : > { %677 = vrot.lane.b32.xlu0 %v1824_v5, %s1398_s5  ;;  %1294 = vmatpush.msra.mxu2 %v895_v1 }
  0xf3   : > { %v1965_v62 = vpop.permute.xlu1 %421  ;;  %v1967_v23 = vpop.permute.xlu2 %475  ;;  %967 = vmatpush.msra.mxu0 %v895_v1 }
  0xf4   : > { %v420_v24 = vpop.permute.xlu0 %419  ;;  %1295 = vmatpush.msra.mxu2 %v894_v7  ;;  %v799_v1 = vsel %vm790_vm4, %v1868_v20, %v1965_v62  ;;  %v703_v62 = vrot.slane %v2446_v47, 2 }
  0xf5   : > { %v1977_v39 = vsel %vm790_vm4, %v1764_v29, %v420_v24  ;;  %v1254_v29 = vld [vmem:[%s2412_s1 + $0x38] sm:$0xff]  ;;  %968 = vmatpush.msra.mxu0 %v894_v7  ;;  %v2445_v24 = vld [vmem:[#allocation4_spill] sm:$0xff] }
  0xf6   : > { %1299 = vmatpush.msra.mxu3 %v1254_v29  ;;  %1057 = vmatpush.msra.mxu1 %v1254_v29  ;;  %v509_v44 = vrot.slane %v2445_v24, 1  ;;  %v457_v29 = vrot.slane %v236_v19, 1  ;;  %v704_v20 = vrot.slane %v2445_v24, 2 }
  0xf7   : > { %1296 = vmatpush.msra.mxu2 %v893_v11  ;;  %969 = vmatpush.msra.mxu0 %v893_v11 }
  0xf8   : > { %1300 = vmatpush.msra.mxu3 %v1253_v8  ;;  %1058 = vmatpush.msra.mxu1 %v1253_v8  ;;  %v510_v50 = vsel %vm364_vm0, %v508_v3, %v509_v44 }
  0xf9   : > { %483 = vrot.lane.b32.xlu1 %v1691_v31, %s1396_s30  ;;  %608 = vrot.lane.b32.xlu2 %v1846_v61, %s1397_s4  ;;  %v454_v31 = vrot.slane %v2442_v30, 1 }
  0xfa   : > { %519 = vrot.lane.b32.xlu0 %v1641_v51, %s1399_s6  ;;  %1301 = vmatpush.msra.mxu3 %v1252_v59 }
  0xfb   : > { %v428_v57 = vpop.permute.xlu1 %427  ;;  %v2003_v46 = vpop.permute.xlu2 %671  ;;  %1059 = vmatpush.msra.mxu1 %v1252_v59  ;;  %v705_v59 = vsel %vm561_vm3, %v703_v62, %v704_v20 }
  0xfc   : > { %v2009_v61 = vsel %vm790_vm4, %v1892_v21, %v428_v57  ;;  %v426_v43 = vpop.permute.xlu0 %425  ;;  %v2022_v21 = vsel %vm364_vm0, %v454_v31, %v455_v28  ;;  %v2078_v31 = vsel %vm364_vm0, %v455_v28, %v457_v29 }
  0xfd   : > { %v2019_v17 = vsel %vm790_vm4, %v1787_v15, %v426_v43  ;;  %v650_v15 = vrot.slane %v2442_v30, 2 }
  0xff   : > { %v2044_v18 = vsel %vm561_vm3, %v650_v15, %v651_v2 }
 0x101   : > { %661 = vrot.lane.b32.xlu1 %v1871_v32, %s1398_s5  ;;  %626 = vrot.lane.b32.xlu2 %v1749_v53, %s1397_s4 }
 0x102   : > { %537 = vrot.lane.b32.xlu0 %v2022_v21, %s1399_s6 }
 0x103   : > { %v434_v41 = vpop.permute.xlu1 %433  ;;  %v2032_v13 = vpop.permute.xlu2 %477 }
 0x104   : > { %v2037_v26 = vsel %vm790_vm4, %v1913_v9, %v434_v41  ;;  %v432_v34 = vpop.permute.xlu0 %431  ;;  %v653_v41 = vrot.slane %v236_v19, 2 }
 0x105   : > { %v2041_v53 = vsel %vm790_vm4, %v1817_v48, %v432_v34 }
 0x106   : > { %v2109_v47 = vsel %vm561_vm3, %v651_v2, %v653_v41 }
 0x109   : > { %679 = vrot.lane.b32.xlu1 %v1895_v10, %s1398_s5  ;;  %732 = vrot.lane.b32.xlu2 %v2044_v18, %s1400_s7 }
 0x10a   : > { %714 = vrot.lane.b32.xlu0 %v2049_v38, %s1400_s7 }
 0x10b   : > { %v2057_v9 = vpop.permute.xlu1 %461  ;;  %v656_v48 = vpop.permute.xlu2 %655 }
 0x10c   : > { %v460_v60 = vpop.permute.xlu0 %459 }
 0x10d   : > { %v808_v35 = vsel %vm807_vm6, %v1842_v37, %v460_v60 }
 0x111   : > { %521 = vrot.lane.b32.xlu1 %v2447_v22, %s1399_s6  ;;  %485 = vrot.lane.b32.xlu2 %v1694_v33, %s1396_s30  ;;  %v816_v33 = vsel %vm807_vm6, %v799_v1, %v1967_v23  ;;  %v2449_v1 = vld [vmem:[#allocation8_spill] sm:$0xff] }
 0x112   : > { %467 = vrot.lane.b32.xlu0 %v1611_v40, %s1396_s30 }
 0x113   : > { %v619_v7 = vpop.permute.xlu1 %618  ;;  %v674_v8 = vpop.permute.xlu2 %673 }
 0x114   : > { %v530_v57 = vpop.permute.xlu0 %529 }
 0x115   : > { %v833_v30 = vsel %vm824_vm7, %v816_v33, %v530_v57 }
 0x116   : > { %v850_v40 = vsel %vm841_vm8, %v833_v30, %v619_v7 }
 0x117   : > { %v867_v43 = vsel %vm858_vm9, %v850_v40, %v2003_v46 }
 0x119   : > { %539 = vrot.lane.b32.xlu1 %v2078_v31, %s1399_s6  ;;  %663 = vrot.lane.b32.xlu2 %v1937_v0, %s1398_s5 }
 0x11a   : > { %610 = vrot.lane.b32.xlu0 %v1793_v52, %s1397_s4  ;;  %v2448_v52 = vld [vmem:[#allocation11_spill] sm:$0xff] }
 0x11b   : > { %v514_v23 = vpop.permute.xlu1 %513  ;;  %v2089_v42 = vpop.permute.xlu2 %479 }
 0x11c   : > { %v725_v28 = vpop.permute.xlu0 %724  ;;  %v825_v34 = vsel %vm824_vm7, %v808_v35, %v514_v23 }
 0x11d   : > { %v884_v11 = vsel %vm875_vm10, %v867_v43, %v725_v28 }
 0x11e   : > { %1244 = vmatmul.msk.f32.vlgmr.msra.gmra.mxu2 %vm901_vm11, %v884_v11  ;;  %1266 = vmatmul.msk.f32.vlgmr.msra.gmra.mxu3 %vm901_vm11, %v884_v11  ;;  %v2450_v11 = vld [vmem:[#allocation10_spill] sm:$0xff] }
 0x121   : > { %716 = vrot.lane.b32.xlu1 %v2448_v52, %s1400_s7  ;;  %681 = vrot.lane.b32.xlu2 %v1957_v4, %s1398_s5 }
 0x122   : > { %628 = vrot.lane.b32.xlu0 %v1824_v5, %s1397_s4 }
 0x123   : > { %v532_v46 = vpop.permute.xlu1 %531  ;;  %v658_v15 = vpop.permute.xlu2 %657 }
 0x124   : > { %v603_v14 = vpop.permute.xlu0 %602 }
 0x125   : > { %v842_v3 = vsel %vm841_vm8, %v825_v34, %v603_v14 }
 0x126   : > { %v859_v37 = vsel %vm858_vm9, %v842_v3, %v656_v48 }
 0x129   : > { %469 = vrot.lane.b32.xlu1 %v1641_v51, %s1396_s30  ;;  %523 = vrot.lane.b32.xlu2 %v2449_v1, %s1399_s6  ;;  %v800_v51 = vsel %vm790_vm4, %v1862_v54, %v1906_v25 }
 0x12a   : > { %734 = vrot.lane.b32.xlu0 %v2109_v47, %s1400_s7  ;;  %v817_v2 = vsel %vm807_vm6, %v800_v51, %v2032_v13 }
 0x12b   : > { %v709_v5 = vpop.permute.xlu1 %708  ;;  %v676_v19 = vpop.permute.xlu2 %675  ;;  %v834_v7 = vsel %vm824_vm7, %v817_v2, %v532_v46 }
 0x12c   : > { %v621_v60 = vpop.permute.xlu0 %620  ;;  %v876_v29 = vsel %vm875_vm10, %v859_v37, %v709_v5 }
 0x12d   : > { %1236 = vmatmul.msk.f32.vlgmr.msra.gmra.mxu0 %vm901_vm11, %v876_v29  ;;  %1258 = vmatmul.msk.f32.vlgmr.msra.gmra.mxu1 %vm901_vm11, %v876_v29  ;;  %v851_v57 = vsel %vm841_vm8, %v834_v7, %v621_v60 }
 0x12e   : > { %v868_v54 = vsel %vm858_vm9, %v851_v57, %v674_v8 }
 0x131   : > { %612 = vrot.lane.b32.xlu1 %v1871_v32, %s1397_s4  ;;  %541 = vrot.lane.b32.xlu2 %v510_v50, %s1399_s6  ;;  %v809_v50 = vsel %vm807_vm6, %v1932_v49, %v2057_v9  ;;  %v818_v49 = vsel %vm807_vm6, %v2019_v17, %v2089_v42 }
 0x132   : > { %487 = vrot.lane.b32.xlu0 %v2022_v21, %s1396_s30 }
 0x133   : > { %v516_v48 = vpop.permute.xlu1 %515  ;;  %v518_v33 = vpop.permute.xlu2 %517 }
 0x134   : > { %v727_v30 = vpop.permute.xlu0 %726  ;;  %v826_v8 = vsel %vm824_vm7, %v809_v50, %v516_v48 }
 0x135   : > { %v885_v25 = vsel %vm875_vm10, %v868_v54, %v727_v30 }
 0x136   : > { %1245 = vmatmul.msk.f32.gmra.mxu2 %vm901_vm11, %v885_v25  ;;  %1267 = vmatmul.msk.f32.gmra.mxu3 %vm901_vm11, %v885_v25 }
 0x139   : > { %630 = vrot.lane.b32.xlu1 %v1895_v10, %s1397_s4  ;;  %718 = vrot.lane.b32.xlu2 %v1799_v16, %s1400_s7 }
 0x13a   : > { %665 = vrot.lane.b32.xlu0 %v2049_v38, %s1398_s5 }
 0x13b   : > { %v534_v32 = vpop.permute.xlu1 %533  ;;  %v536_v21 = vpop.permute.xlu2 %535 }
 0x13c   : > { %v605_v13 = vpop.permute.xlu0 %604  ;;  %v835_v9 = vsel %vm824_vm7, %v818_v49, %v534_v32 }
 0x13d   : > { %v843_v62 = vsel %vm841_vm8, %v826_v8, %v605_v13 }
 0x13e   : > { %v860_v23 = vsel %vm858_vm9, %v843_v62, %v658_v15 }
 0x141   : > { %736 = vrot.lane.b32.xlu1 %v705_v59, %s1400_s7  ;;  %471 = vrot.lane.b32.xlu2 %v2447_v22, %s1396_s30  ;;  %v239_v22 = vld [vmem:[%s1461_s26 + $0xe8] sm:$0xff]  ;;  %s1231_s26 = sshll.u32 %s1375_s12, 3 }
 0x142   : > { %683 = vrot.lane.b32.xlu0 %v2044_v18, %s1398_s5  ;;  %v511_v15 = vrot.slane %v239_v22, 1  ;;  %p202_p7 = scmp.lt.s32.totalorder %s1231_s26, 15 }
 0x143   : > { %v711_v10 = vpop.permute.xlu1 %710  ;;  %v713_v40 = vpop.permute.xlu2 %712 }
 0x144   : > { %v623_v28 = vpop.permute.xlu0 %622  ;;  %v877_v43 = vsel %vm875_vm10, %v860_v23, %v711_v10  ;;  %s2465_s26 = smov (!%p202_p7, %s1231_s26), 15 }
 0x145   : > { %1237 = vmatmul.msk.f32.gmra.mxu0 %vm901_vm11, %v877_v43  ;;  %1259 = vmatmul.msk.f32.gmra.mxu1 %vm901_vm11, %v877_v43  ;;  %v852_v18 = vsel %vm841_vm8, %v835_v9, %v623_v28  ;;  %s1232_s12 = sshll.u32 %s2465_s26, 2 }
 0x146   : > { %v869_v17 = vsel %vm858_vm9, %v852_v18, %v676_v19 }
 0x149   : > { %489 = vrot.lane.b32.xlu1 %v2078_v31, %s1396_s30  ;;  %614 = vrot.lane.b32.xlu2 %v1937_v0, %s1397_s4  ;;  %v512_v31 = vsel %vm364_vm0, %v509_v44, %v511_v15  ;;  %v706_v0 = vrot.slane %v239_v22, 2 }
 0x14a   : > { %525 = vrot.lane.b32.xlu0 %v2450_v11, %s1399_s6 }
 0x14b   : > { %v464_v59 = vpop.permute.xlu1 %463  ;;  %v466_v46 = vpop.permute.xlu2 %465  ;;  %v707_v3 = vsel %vm561_vm3, %v704_v20, %v706_v0 }
 0x14c   : > { %v729_v41 = vpop.permute.xlu0 %728  ;;  %v810_v5 = vsel %vm807_vm6, %v1925_v63, %v464_v59  ;;  %v811_v30 = vsel %vm807_vm6, %v1865_v6, %v466_v46 }
 0x14d   : > { %v886_v42 = vsel %vm875_vm10, %v869_v17, %v729_v41 }
 0x14e   : > { %1246 = vmatmul.msk.f32.gmra.mxu2 %vm901_vm11, %v886_v42  ;;  %1268 = vmatmul.msk.f32.gmra.mxu3 %vm901_vm11, %v886_v42 }
 0x151   : > { %667 = vrot.lane.b32.xlu1 %v2448_v52, %s1398_s5  ;;  %632 = vrot.lane.b32.xlu2 %v1957_v4, %s1397_s4  ;;  %v827_v4 = vsel %vm824_vm7, %v810_v5, %v518_v33 }
 0x152   : > { %543 = vrot.lane.b32.xlu0 %v512_v31, %s1399_s6 }
 0x153   : > { %v607_v14 = vpop.permute.xlu1 %606  ;;  %v609_v34 = vpop.permute.xlu2 %608 }
 0x154   : > { %v482_v35 = vpop.permute.xlu0 %481  ;;  %v844_v52 = vsel %vm841_vm8, %v827_v4, %v607_v14 }
 0x155   : > { %v819_v63 = vsel %vm807_vm6, %v2009_v61, %v482_v35 }
 0x159   : > { %685 = vrot.lane.b32.xlu1 %v2109_v47, %s1398_s5  ;;  %738 = vrot.lane.b32.xlu2 %v707_v3, %s1400_s7  ;;  %v836_v47 = vsel %vm824_vm7, %v819_v63, %v536_v21 }
 0x15a   : > { %720 = vrot.lane.b32.xlu0 %v1730_v58, %s1400_s7  ;;  %v2451_v58 = vld [vmem:[#allocation9_spill] sm:$0xff] }
 0x15b   : > { %v625_v44 = vpop.permute.xlu1 %624  ;;  %v627_v20 = vpop.permute.xlu2 %626 }
 0x15c   : > { %v660_v19 = vpop.permute.xlu0 %659  ;;  %v853_v29 = vsel %vm841_vm8, %v836_v47, %v625_v44 }
 0x15d   : > { %v861_v24 = vsel %vm858_vm9, %v844_v52, %v660_v19 }
 0x15e   : > { %v878_v37 = vsel %vm875_vm10, %v861_v24, %v713_v40 }
 0x15f   : > { %1238 = vmatmul.msk.f32.gmra.mxu0 %vm901_vm11, %v878_v37  ;;  %1260 = vmatmul.msk.f32.gmra.mxu1 %vm901_vm11, %v878_v37 }
 0x161   : > { %527 = vrot.lane.b32.xlu1 %v2451_v58, %s1399_s6  ;;  %616 = vrot.lane.b32.xlu2 %v2049_v38, %s1397_s4 }
 0x162   : > { %473 = vrot.lane.b32.xlu0 %v2449_v1, %s1396_s30  ;;  %s1233_s30 = sshll.u32 %s2463_s13, 6 }
 0x163   : > { %v731_v60 = vpop.permute.xlu1 %730  ;;  %v733_v61 = vpop.permute.xlu2 %732  ;;  %s206_s4 = sadd.s32 %s1233_s30, %s1232_s12 }
 0x164   : > { %v678_v51 = vpop.permute.xlu0 %677 }
 0x165   : > { %v870_v2 = vsel %vm858_vm9, %v853_v29, %v678_v51 }
 0x166   : > { %v887_v7 = vsel %vm875_vm10, %v870_v2, %v731_v60 }
 0x167   : > { %1247 = vmatmul.msk.f32.gmra.mxu2 %vm901_vm11, %v887_v7  ;;  %1269 = vmatmul.msk.f32.gmra.mxu3 %vm901_vm11, %v887_v7 }
 0x169   : > { %722 = vrot.lane.b32.xlu1 %v1796_v12, %s1400_s7 }
 0x16a   : > { %669 = vrot.lane.b32.xlu0 %v1799_v16, %s1398_s5  ;;  %s1234_s5 = sshll.u32 %s206_s4, 3 }
 0x16b   : > { %v484_v38 = vpop.permute.xlu1 %483  ;;  %v486_v57 = vpop.permute.xlu2 %485  ;;  %s2258_s22 = scalar_lea.vmem %s2414_s3, %s1234_s5 }
 0x16c   : > { %v520_v1 = vpop.permute.xlu0 %519  ;;  %v820_v54 = vsel %vm807_vm6, %v1928_v36, %v484_v38 }
 0x16d   : > { %v828_v25 = vsel %vm824_vm7, %v811_v30, %v520_v1 }
 0x16e   : > { %v845_v12 = vsel %vm841_vm8, %v828_v25, %v609_v34 }
 0x173   : > { %v662_v48 = vpop.permute.xlu1 %661  ;;  %v664_v50 = vpop.permute.xlu2 %663 }
 0x174   : > { %v538_v33 = vpop.permute.xlu0 %537  ;;  %v862_v13 = vsel %vm858_vm9, %v845_v12, %v662_v48 }
 0x175   : > { %v837_v32 = vsel %vm824_vm7, %v820_v54, %v538_v33 }
 0x176   : > { %v854_v16 = vsel %vm841_vm8, %v837_v32, %v627_v20 }
 0x17b   : > { %v680_v21 = vpop.permute.xlu1 %679  ;;  %v682_v23 = vpop.permute.xlu2 %681 }
 0x17c   : > { %v871_v8 = vsel %vm858_vm9, %v854_v16, %v680_v21  ;;  %v715_v62 = vpop.permute.xlu0 %714 }
 0x17d   : > { %v879_v6 = vsel %vm875_vm10, %v862_v13, %v715_v62  ;;  %v888_v36 = vsel %vm875_vm10, %v871_v8, %v733_v61 }
 0x17e   : > { %1239 = vmatmul.msk.f32.gmra.mxu0 %vm901_vm11, %v879_v6  ;;  %1261 = vmatmul.msk.f32.gmra.mxu1 %vm901_vm11, %v879_v6 }
 0x17f   : > { %1248 = vmatmul.msk.f32.gmra.mxu2 %vm901_vm11, %v888_v36  ;;  %1270 = vmatmul.msk.f32.gmra.mxu3 %vm901_vm11, %v888_v36 }
 0x183   : > { %v522_v10 = vpop.permute.xlu1 %521  ;;  %v524_v22 = vpop.permute.xlu2 %523 }
 0x184   : > { %v468_v40 = vpop.permute.xlu0 %467 }
 0x185   : > { %v812_v43 = vsel %vm807_vm6, %v1954_v56, %v468_v40  ;;  %v821_v56 = vsel %vm807_vm6, %v2041_v53, %v486_v57  ;;  %v2253_v53 = vld [vmem:[%s2413_s2] ss:$0 sm:$0xff] }
 0x186   : > { %v829_v9 = vsel %vm824_vm7, %v812_v43, %v522_v10 }
 0x18b   : > { %v540_v28 = vpop.permute.xlu1 %539  ;;  %v542_v42 = vpop.permute.xlu2 %541 }
 0x18c   : > { %v611_v49 = vpop.permute.xlu0 %610  ;;  %v838_v41 = vsel %vm824_vm7, %v821_v56, %v540_v28 }
 0x18d   : > { %v846_v18 = vsel %vm841_vm8, %v829_v9, %v611_v49 }
 0x18e   : > { %v863_v59 = vsel %vm858_vm9, %v846_v18, %v664_v50 }
 0x193   : > { %v717_v11 = vpop.permute.xlu1 %716  ;;  %v719_v52 = vpop.permute.xlu2 %718 }
 0x194   : > { %v629_v46 = vpop.permute.xlu0 %628  ;;  %v880_v15 = vsel %vm875_vm10, %v863_v59, %v717_v11 }
 0x195   : > { %1240 = vmatmul.msk.f32.gmra.mxu0 %vm901_vm11, %v880_v15  ;;  %1262 = vmatmul.msk.f32.gmra.mxu1 %vm901_vm11, %v880_v15  ;;  %v855_v17 = vsel %vm841_vm8, %v838_v41, %v629_v46 }
 0x196   : > { %v872_v14 = vsel %vm858_vm9, %v855_v17, %v682_v23 }
 0x19b   : > { %v470_v31 = vpop.permute.xlu1 %469  ;;  %v472_v7 = vpop.permute.xlu2 %471 }
 0x19c   : > { %v735_v0 = vpop.permute.xlu0 %734  ;;  %v813_v24 = vsel %vm807_vm6, %v1947_v55, %v470_v31  ;;  %v814_v40 = vsel %vm807_vm6, %v1889_v45, %v472_v7 }
 0x19d   : > { %v889_v35 = vsel %vm875_vm10, %v872_v14, %v735_v0  ;;  %v830_v63 = vsel %vm824_vm7, %v813_v24, %v524_v22 }
 0x19e   : > { %1249 = vmatmul.msk.f32.gmra.mxu2 %vm901_vm11, %v889_v35  ;;  %1271 = vmatmul.msk.f32.gmra.mxu3 %vm901_vm11, %v889_v35 }
 0x1a1   : > { %v995_v34 = vpop.f32.mrf.mxu2  ;;  %v1085_v3 = vpop.f32.mrf.mxu3 }
 0x1a2   : > { %v996_v5 = vadd.f32 %v2253_v53, %v995_v34  ;;  %v1086_v4 = vadd.f32 %v2253_v53, %v1085_v3 }
 0x1a3   : > { %v613_v44 = vpop.permute.xlu1 %612  ;;  %v615_v54 = vpop.permute.xlu2 %614 }
 0x1a4   : > { %1027 = vst.msk [vmem:[%s2258_s22 + $0x80] sm:$0xff] %vm773_vm2, %v996_v5  ;;  %v488_v19 = vpop.permute.xlu0 %487  ;;  %v847_v29 = vsel %vm841_vm8, %v830_v63, %v613_v44 }
 0x1a5   : > { %1282 = vst.msk [vmem:[%s2258_s22 + $0x90] sm:$0xff] %vm773_vm2, %v1086_v4  ;;  %v822_v61 = vsel %vm807_vm6, %v2037_v26, %v488_v19 }
 0x1a6   : > { %v839_v38 = vsel %vm824_vm7, %v822_v61, %v542_v42 }
 0x1aa   : > { %v971_v20 = vpop.f32.mrf.mxu0  ;;  %v1061_v37 = vpop.f32.mrf.mxu1 }
 0x1ab   : > { %v972_v58 = vadd.f32 %v2253_v53, %v971_v20  ;;  %v1062_v47 = vadd.f32 %v2253_v53, %v1061_v37  ;;  %v631_v60 = vpop.permute.xlu1 %630  ;;  %v633_v13 = vpop.permute.xlu2 %632 }
 0x1ac   : > { %v666_v51 = vpop.permute.xlu0 %665  ;;  %v856_v57 = vsel %vm841_vm8, %v839_v38, %v631_v60 }
 0x1ad   : > { %1019 = vst.msk [vmem:[%s2258_s22] sm:$0xff] %vm773_vm2, %v972_v58  ;;  %v864_v2 = vsel %vm858_vm9, %v847_v29, %v666_v51 }
 0x1ae   : > { %1274 = vst.msk [vmem:[%s2258_s22 + $0x10] sm:$0xff] %vm773_vm2, %v1062_v47  ;;  %v881_v55 = vsel %vm875_vm10, %v864_v2, %v719_v52 }
 0x1af   : > { %1241 = vmatmul.msk.f32.gmra.mxu0 %vm901_vm11, %v881_v55  ;;  %1263 = vmatmul.msk.f32.gmra.mxu1 %vm901_vm11, %v881_v55 }
 0x1b3   : > { %v737_v1 = vpop.permute.xlu1 %736  ;;  %v739_v49 = vpop.permute.xlu2 %738 }
 0x1b4   : > { %v684_v48 = vpop.permute.xlu0 %683 }
 0x1b5   : > { %v873_v33 = vsel %vm858_vm9, %v856_v57, %v684_v48 }
 0x1b6   : > { %v890_v30 = vsel %vm875_vm10, %v873_v33, %v737_v1 }
 0x1b7   : > { %1250 = vmatmul.msk.f32.gmra.mxu2 %vm901_vm11, %v890_v30  ;;  %1272 = vmatmul.msk.f32.gmra.mxu3 %vm901_vm11, %v890_v30 }
 0x1b9   : > { %v998_v25 = vpop.f32.mrf.mxu2  ;;  %v1088_v26 = vpop.f32.mrf.mxu3 }
 0x1ba   : > { %v999_v32 = vadd.f32 %v2253_v53, %v998_v25  ;;  %v1089_v12 = vadd.f32 %v2253_v53, %v1088_v26 }
 0x1bb   : > { %v490_v21 = vpop.permute.xlu1 %489  ;;  %v617_v35 = vpop.permute.xlu2 %616 }
 0x1bc   : > { %1028 = vst.msk [vmem:[%s2258_s22 + $0x88] sm:$0xff] %vm773_vm2, %v999_v32  ;;  %v526_v16 = vpop.permute.xlu0 %525  ;;  %v823_v23 = vsel %vm807_vm6, %v1950_v27, %v490_v21 }
 0x1bd   : > { %1283 = vst.msk [vmem:[%s2258_s22 + $0x98] sm:$0xff] %vm773_vm2, %v1089_v12  ;;  %v831_v28 = vsel %vm824_vm7, %v814_v40, %v526_v16 }
 0x1be   : > { %v848_v9 = vsel %vm841_vm8, %v831_v28, %v615_v54 }
 0x1c2   : > { %v974_v50 = vpop.f32.mrf.mxu0  ;;  %v1064_v8 = vpop.f32.mrf.mxu1 }
 0x1c3   : > { %v975_v62 = vadd.f32 %v2253_v53, %v974_v50  ;;  %v1065_v6 = vadd.f32 %v2253_v53, %v1064_v8  ;;  %v668_v36 = vpop.permute.xlu1 %667 }
 0x1c4   : > { %v544_v10 = vpop.permute.xlu0 %543  ;;  %v865_v11 = vsel %vm858_vm9, %v848_v9, %v668_v36 }
 0x1c5   : > { %1020 = vst.msk [vmem:[%s2258_s22 + $0x8] sm:$0xff] %vm773_vm2, %v975_v62  ;;  %v840_v43 = vsel %vm824_vm7, %v823_v23, %v544_v10 }
 0x1c6   : > { %1275 = vst.msk [vmem:[%s2258_s22 + $0x18] sm:$0xff] %vm773_vm2, %v1065_v6  ;;  %v857_v22 = vsel %vm841_vm8, %v840_v43, %v633_v13 }
 0x1cb   : > { %v686_v18 = vpop.permute.xlu1 %685 }
 0x1cc   : > { %v874_v59 = vsel %vm858_vm9, %v857_v22, %v686_v18  ;;  %v721_v45 = vpop.permute.xlu0 %720 }
 0x1cd   : > { %v882_v46 = vsel %vm875_vm10, %v865_v11, %v721_v45  ;;  %v891_v27 = vsel %vm875_vm10, %v874_v59, %v739_v49 }
 0x1ce   : > { %1242 = vmatmul.msk.f32.gmra.mxu0 %vm901_vm11, %v882_v46  ;;  %1264 = vmatmul.msk.f32.gmra.mxu1 %vm901_vm11, %v882_v46 }
 0x1cf   : > { %1251 = vmatmul.msk.f32.gmra.mxu2 %vm901_vm11, %v891_v27  ;;  %1273 = vmatmul.msk.f32.gmra.mxu3 %vm901_vm11, %v891_v27 }
 0x1d1   : > { %v1001_v15 = vpop.f32.mrf.mxu2  ;;  %v1091_v56 = vpop.f32.mrf.mxu3 }
 0x1d2   : > { %v1002_v41 = vadd.f32 %v2253_v53, %v1001_v15  ;;  %v1092_v17 = vadd.f32 %v2253_v53, %v1091_v56 }
 0x1d3   : > { %v528_v42 = vpop.permute.xlu1 %527 }
 0x1d4   : > { %1029 = vst.msk [vmem:[%s2258_s22 + $0xa0] sm:$0xff] %vm773_vm2, %v1002_v41  ;;  %v474_v31 = vpop.permute.xlu0 %473 }
 0x1d5   : > { %1284 = vst.msk [vmem:[%s2258_s22 + $0xb0] sm:$0xff] %vm773_vm2, %v1092_v17  ;;  %v815_v0 = vsel %vm807_vm6, %v1977_v39, %v474_v31 }
 0x1d6   : > { %v832_v14 = vsel %vm824_vm7, %v815_v0, %v528_v42 }
 0x1d7   : > { %v849_v3 = vsel %vm841_vm8, %v832_v14, %v617_v35 }
 0x1db   : > { %v723_v34 = vpop.permute.xlu1 %722 }
 0x1dc   : > { %v670_v5 = vpop.permute.xlu0 %669  ;;  %v977_v4 = vpop.f32.mrf.mxu0 }
 0x1dd   : > { %v866_v44 = vsel %vm858_vm9, %v849_v3, %v670_v5  ;;  %v978_v52 = vadd.f32 %v2253_v53, %v977_v4  ;;  %v1067_v19 = vpop.f32.mrf.mxu1 }
 0x1de   : > { %v1068_v24 = vadd.f32 %v2253_v53, %v1067_v19  ;;  %v883_v39 = vsel %vm875_vm10, %v866_v44, %v723_v34 }
 0x1df   : > { %1021 = vst.msk [vmem:[%s2258_s22 + $0x20] sm:$0xff] %vm773_vm2, %v978_v52  ;;  %1243 = vmatmul.msk.f32.gmra.mxu0 %vm901_vm11, %v883_v39  ;;  %1265 = vmatmul.msk.f32.gmra.mxu1 %vm901_vm11, %v883_v39 }
 0x1e0   : > { %1276 = vst.msk [vmem:[%s2258_s22 + $0x30] sm:$0xff] %vm773_vm2, %v1068_v24 }
 0x1ea   : > { %v1004_v20 = vpop.f32.mrf.mxu2  ;;  %v1094_v37 = vpop.f32.mrf.mxu3 }
 0x1eb   : > { %v1005_v63 = vadd.f32 %v2253_v53, %v1004_v20  ;;  %v1095_v58 = vadd.f32 %v2253_v53, %v1094_v37 }
 0x1ed   : > { %1030 = vst.msk [vmem:[%s2258_s22 + $0xa8] sm:$0xff] %vm773_vm2, %v1005_v63 }
 0x1ee   : > { %1285 = vst.msk [vmem:[%s2258_s22 + $0xb8] sm:$0xff] %vm773_vm2, %v1095_v58 }
 0x1fb   : > { %v980_v47 = vpop.f32.mrf.mxu0  ;;  %v1070_v60 = vpop.f32.mrf.mxu1 }
 0x1fc   : > { %v981_v29 = vadd.f32 %v2253_v53, %v980_v47  ;;  %v1071_v51 = vadd.f32 %v2253_v53, %v1070_v60 }
 0x1fe   : > { %1022 = vst.msk [vmem:[%s2258_s22 + $0x28] sm:$0xff] %vm773_vm2, %v981_v29 }
 0x1ff   : > { %1277 = vst.msk [vmem:[%s2258_s22 + $0x38] sm:$0xff] %vm773_vm2, %v1071_v51 }
 0x202   : > { %v1007_v2 = vpop.f32.mrf.mxu2  ;;  %v1097_v7 = vpop.f32.mrf.mxu3 }
 0x203   : > { %v1008_v55 = vadd.f32 %v2253_v53, %v1007_v2  ;;  %v1098_v61 = vadd.f32 %v2253_v53, %v1097_v7 }
 0x205   : > { %1031 = vst.msk [vmem:[%s2258_s22 + $0xc0] sm:$0xff] %vm773_vm2, %v1008_v55 }
 0x206   : > { %1286 = vst.msk [vmem:[%s2258_s22 + $0xd0] sm:$0xff] %vm773_vm2, %v1098_v61 }
 0x212   : > { %v983_v38 = vpop.f32.mrf.mxu0  ;;  %v1073_v1 = vpop.f32.mrf.mxu1 }
 0x213   : > { %v984_v57 = vadd.f32 %v2253_v53, %v983_v38  ;;  %v1074_v48 = vadd.f32 %v2253_v53, %v1073_v1 }
 0x215   : > { %1023 = vst.msk [vmem:[%s2258_s22 + $0x40] sm:$0xff] %vm773_vm2, %v984_v57 }
 0x216   : > { %1278 = vst.msk [vmem:[%s2258_s22 + $0x50] sm:$0xff] %vm773_vm2, %v1074_v48 }
 0x221   : > { %v1010_v33 = vpop.f32.mrf.mxu2  ;;  %v1100_v30 = vpop.f32.mrf.mxu3 }
 0x222   : > { %v1011_v54 = vadd.f32 %v2253_v53, %v1010_v33  ;;  %v1101_v25 = vadd.f32 %v2253_v53, %v1100_v30 }
 0x224   : > { %1032 = vst.msk [vmem:[%s2258_s22 + $0xc8] sm:$0xff] %vm773_vm2, %v1011_v54 }
 0x225   : > { %1287 = vst.msk [vmem:[%s2258_s22 + $0xd8] sm:$0xff] %vm773_vm2, %v1101_v25 }
 0x22c   : > { %v986_v26 = vpop.f32.mrf.mxu0  ;;  %v1076_v32 = vpop.f32.mrf.mxu1 }
 0x22d   : > { %v987_v12 = vadd.f32 %v2253_v53, %v986_v26  ;;  %v1077_v21 = vadd.f32 %v2253_v53, %v1076_v32 }
 0x22f   : > { %1024 = vst.msk [vmem:[%s2258_s22 + $0x48] sm:$0xff] %vm773_vm2, %v987_v12 }
 0x230   : > { %1279 = vst.msk [vmem:[%s2258_s22 + $0x58] sm:$0xff] %vm773_vm2, %v1077_v21 }
 0x23a   : > { %v1013_v16 = vpop.f32.mrf.mxu2  ;;  %v1103_v13 = vpop.f32.mrf.mxu3 }
 0x23b   : > { %v1014_v50 = vadd.f32 %v2253_v53, %v1013_v16  ;;  %v1104_v8 = vadd.f32 %v2253_v53, %v1103_v13 }
 0x23d   : > { %1033 = vst.msk [vmem:[%s2258_s22 + $0xe0] sm:$0xff] %vm773_vm2, %v1014_v50 }
 0x23e   : > { %1288 = vst.msk [vmem:[%s2258_s22 + $0xf0] sm:$0xff] %vm773_vm2, %v1104_v8 }
 0x24b   : > { %v989_v62 = vpop.f32.mrf.mxu0  ;;  %v1079_v6 = vpop.f32.mrf.mxu1 }
 0x24c   : > { %v990_v36 = vadd.f32 %v2253_v53, %v989_v62  ;;  %v1080_v10 = vadd.f32 %v2253_v53, %v1079_v6 }
 0x24e   : > { %1025 = vst.msk [vmem:[%s2258_s22 + $0x60] sm:$0xff] %vm773_vm2, %v990_v36 }
 0x24f   : > { %1280 = vst.msk [vmem:[%s2258_s22 + $0x70] sm:$0xff] %vm773_vm2, %v1080_v10 }
 0x252   : > { %v1016_v40 = vpop.f32.mrf.mxu2  ;;  %v1106_v23 = vpop.f32.mrf.mxu3 }
 0x253   : > { %v1017_v28 = vadd.f32 %v2253_v53, %v1016_v40  ;;  %v1107_v43 = vadd.f32 %v2253_v53, %v1106_v23 }
 0x255   : > { %1034 = vst.msk [vmem:[%s2258_s22 + $0xe8] sm:$0xff] %vm773_vm2, %v1017_v28 }
 0x256   : > { %1289 = vst.msk [vmem:[%s2258_s22 + $0xf8] sm:$0xff] %vm773_vm2, %v1107_v43 }
 0x25c   : > { %v992_v49 = vpop.f32.mrf.mxu0  ;;  %v1082_v9 = vpop.f32.mrf.mxu1 }
 0x25d   : > { %v993_v22 = vadd.f32 %v2253_v53, %v992_v49  ;;  %v1083_v18 = vadd.f32 %v2253_v53, %v1082_v9 }
 0x25f   : > { %1026 = vst.msk [vmem:[%s2258_s22 + $0x68] sm:$0xff] %vm773_vm2, %v993_v22 }
 0x260   : > { %1281 = vst.msk [vmem:[%s2258_s22 + $0x78] sm:$0xff] %vm773_vm2, %v1083_v18 }
 0x261 PF: > { %s13_s16 = sadd.s32 1, %s1391_s16   ;;  %s2452_s12 = smov %s1383_s14 }
 0x262   : > { %p10_p8 = scmp.ge.s32.totalorder %s13_s16, 6   ;;  %s2453_s13 = smov %s1387_s15 }
 0x263   : > { %s2454_s14 = smov %s2457_s17  ;;  %s2455_s15 = smov %s2461_s18 }
 0x264   :  { %12 = sbr.rel (!%p10_p8) target bundleno = 3 (0x3), region = 64 }

</bundles_post_ra>
